<compile_context>
chip_gen: v5e
topology: v5e:2x2
jax: 0.10.0
libtpu: 0.0.40
codegen_flags: <defaults>
</compile_context>

<pallas_src>
import functools

import jax
import jax.numpy as jnp
from jax.experimental import pallas as pl
from jax.experimental.pallas import tpu as pltpu


def _round_up(x, m):
    return (x + m - 1) // m * m


def _conv3x3_kernel(x_ref, w_ref, b_ref, o_ref, *, Wp, S, Nb):
    # x_ref: (1, C, Lin)  lane-merged flattened reflect-padded images (slot S per image)
    # w_ref: (9, O, C)    per-tap weight blocks, tap t = kh*3 + kw
    # b_ref: (O, 1)       bias column (lane-broadcast)
    # o_ref: (Nb, O, S)   per-image "over-wide" outputs (garbage cols sliced off outside)
    Lout = Nb * S
    acc = None
    # 9 direct tap matmuls from static lane-shifted ref slices; f32 accumulation.
    for kh in range(3):
        for kw in range(3):
            t = kh * 3 + kw
            s = kh * Wp + kw
            d = jnp.dot(w_ref[t], x_ref[0, :, pl.ds(s, Lout)],
                        preferred_element_type=jnp.float32)
            acc = d if acc is None else acc + d
    acc = acc + b_ref[...].astype(jnp.float32)
    # Per-image stores; i * S is a multiple of 128 so these are vreg-aligned
    # lane slices and wide unmasked stores.
    for i in range(Nb):
        o_ref[i] = acc[:, i * S:(i + 1) * S].astype(o_ref.dtype)


def conv3x3(x, weight, bias, *, images_per_step=None):
    """Equivalent of Conv3x3(use_refl=True).forward.

    x:      (N, C, H, W) float32
    weight: (O, C, 3, 3) float32
    bias:   (O,)         float32
    returns (N, O, H, W) float32
    """
    N, C, H, W = x.shape
    O = weight.shape[0]
    Hp, Wp = H + 2, W + 2
    HWw = H * Wp                        # valid over-wide output length per image
    S = _round_up(Hp * Wp, 128)         # per-image lane slot (>= Hp*Wp >= HWw)

    # Images per grid step: keep the lane extent per step moderate and leave at
    # least two grid steps (when possible) so v7x's two TensorCores both work.
    if images_per_step is None:
        Nb = max(1, min(N, (8 * 1024) // S))
        if N >= 2:
            Nb = min(Nb, -(-N // 2))
    else:
        Nb = max(1, min(int(images_per_step), N))
    Ng = -(-N // Nb)
    N_pad = Ng * Nb

    Lout = Nb * S
    Lin = _round_up(Lout + 2 * Wp + 2, 128)   # max tap shift is 2*Wp + 2

    # Reflection pad (nn.ReflectionPad2d(1)), flatten spatial, pad each image to
    # its S-lane slot and merge Nb images on the lane axis per grid step.  The
    # zero tails only feed over-wide/garbage output lanes that are sliced off.
    # TODO(synk): fold this pad/relayout into the kernel for large images.
    xp = jnp.pad(x, ((0, 0), (0, 0), (1, 1), (1, 1)), mode="reflect")
    xf = xp.reshape(N, C, Hp * Wp)
    xf = jnp.pad(xf, ((0, N_pad - N), (0, 0), (0, S - Hp * Wp)))
    xg = xf.reshape(Ng, Nb, C, S).transpose(0, 2, 1, 3).reshape(Ng, C, Lout)
    xg = jnp.pad(xg, ((0, 0), (0, 0), (0, Lin - Lout)))

    # Per-tap weight blocks: w_taps[kh*3 + kw] = weight[:, :, kh, kw]  -> (O, C)
    w_taps = jnp.transpose(weight, (2, 3, 0, 1)).reshape(9, O, C)
    b_col = bias.reshape(O, 1)

    in_bytes = C * Lin * 4
    out_bytes = Nb * O * S * 4
    vmem_limit = int(min(64 << 20,
                         max(32 << 20, 4 * (in_bytes + out_bytes) + (1 << 20))))

    out_wide = pl.pallas_call(
        functools.partial(_conv3x3_kernel, Wp=Wp, S=S, Nb=Nb),
        out_shape=jax.ShapeDtypeStruct((N_pad, O, S), x.dtype),
        grid_spec=pltpu.PrefetchScalarGridSpec(
            num_scalar_prefetch=0,
            grid=(Ng,),
            in_specs=[
                pl.BlockSpec((1, C, Lin), lambda g: (g, 0, 0)),
                pl.BlockSpec((9, O, C), lambda g: (0, 0, 0)),
                pl.BlockSpec((O, 1), lambda g: (0, 0)),
            ],
            out_specs=pl.BlockSpec((Nb, O, S), lambda g: (g, 0, 0)),
        ),
        compiler_params=pltpu.CompilerParams(
            dimension_semantics=("parallel",),
            vmem_limit_bytes=vmem_limit),
    )(xg, w_taps, b_col)

    # Already channel-major (NCHW); drop lane padding and the 2 over-wide cols.
    return out_wide[:N, :, :HWw].reshape(N, O, H, Wp)[:, :, :, :W]


def conv3x3_reference(x, weight, bias):
    """Pure-JAX reference (reflection pad + VALID 3x3 conv), for validation."""
    xp = jnp.pad(x, ((0, 0), (0, 0), (1, 1), (1, 1)), mode="reflect")
    out = jax.lax.conv_general_dilated(
        xp, weight, window_strides=(1, 1), padding="VALID",
        dimension_numbers=("NCHW", "OIHW", "NCHW"),
    )
    return out + bias[None, :, None, None]


if __name__ == "__main__":
    # Small deterministic setup consistent with the module:
    # in_channels=4, out_channels=8, batch=2, spatial=16x16.
    N, C, H, W, O = 2, 4, 16, 16, 8
    key = jax.random.PRNGKey(0)
    kx, kw_, kb = jax.random.split(key, 3)

    x = jax.random.normal(kx, (N, C, H, W), dtype=jnp.float32)
    # Deterministic "Conv2d-like" init (uniform in +/- 1/sqrt(fan_in)).
    fan_in = C * 3 * 3
    bound = 1.0 / (fan_in ** 0.5)
    weight = jax.random.uniform(kw_, (O, C, 3, 3), jnp.float32, -bound, bound)
    bias = jax.random.uniform(kb, (O,), jnp.float32, -bound, bound)

    ref = conv3x3_reference(x, weight, bias)

    # Default grouping (keeps >=2 grid steps for v7x's two TCs).
    out = jax.block_until_ready(jax.jit(conv3x3)(x, weight, bias))
    assert out.shape == (N, O, H, W)
    assert jnp.allclose(out, ref, atol=1e-4, rtol=1e-4)

    # Lane-merged grouping (2 images per grid step) exercises the Nb>1 path.
    conv_grouped = jax.jit(functools.partial(conv3x3, images_per_step=2))
    out2 = jax.block_until_ready(conv_grouped(x, weight, bias))
    assert out2.shape == (N, O, H, W)
    assert jnp.allclose(out2, ref, atol=1e-4, rtol=1e-4)

    print("KERNEL_OK")
</pallas_src>

<mosaic_0001>
module attributes {stable_mosaic.version = 11 : i64} {
  func.func @_conv3x3_kernel(%arg0: i32, %arg1: memref<1x4x512xf32, #tpu.memory_space<vmem>>, %arg2: memref<9x8x4xf32, #tpu.memory_space<vmem>>, %arg3: memref<8x1xf32, #tpu.memory_space<vmem>>, %arg4: memref<1x8x384xf32, #tpu.memory_space<vmem>>) attributes {dimension_semantics = [#tpu.dimension_semantics<parallel>], iteration_bounds = array<i64: 2>, scalar_prefetch = 0 : i64, scratch_operands = 0 : i64, tpu.core_type = #tpu.core_type<tc>, window_params = [{transform_indices = @transform_0, window_bounds = array<i64: 1, 4, 512>}, {pipeline_mode = #tpu.pipeline_mode<synchronous>, transform_indices = @transform_1, window_bounds = array<i64: 9, 8, 4>}, {pipeline_mode = #tpu.pipeline_mode<synchronous>, transform_indices = @transform_2, window_bounds = array<i64: 8, 1>}, {transform_indices = @transform_3, window_bounds = array<i64: 1, 8, 384>}]} {
    %c0 = arith.constant 0 : index
    %c0_0 = arith.constant 0 : index
    %c0_1 = arith.constant 0 : index
    %0 = vector.load %arg2[%c0, %c0_0, %c0_1] : memref<9x8x4xf32, #tpu.memory_space<vmem>>, vector<1x8x4xf32>
    %1 = vector.shape_cast %0 : vector<1x8x4xf32> to vector<8x4xf32>
    %c0_2 = arith.constant 0 : index
    %c0_3 = arith.constant 0 : index
    %c0_4 = arith.constant 0 : index
    %2 = vector.load %arg1[%c0_2, %c0_3, %c0_4] : memref<1x4x512xf32, #tpu.memory_space<vmem>>, vector<1x4x384xf32>
    %3 = vector.shape_cast %2 : vector<1x4x384xf32> to vector<4x384xf32>
    %cst = arith.constant dense<0.000000e+00> : vector<8x384xf32>
    %4 = tpu.matmul %1, %3, %cst {dimension_numbers = #tpu.dot_dimension_numbers<[1], [0], [0], [1], [0, 0, 1, 1], [], []>} : vector<8x4xf32>, vector<4x384xf32>, vector<8x384xf32> -> vector<8x384xf32>
    %c1 = arith.constant 1 : index
    %c0_5 = arith.constant 0 : index
    %c0_6 = arith.constant 0 : index
    %5 = vector.load %arg2[%c1, %c0_5, %c0_6] : memref<9x8x4xf32, #tpu.memory_space<vmem>>, vector<1x8x4xf32>
    %6 = vector.shape_cast %5 : vector<1x8x4xf32> to vector<8x4xf32>
    %c0_7 = arith.constant 0 : index
    %c0_8 = arith.constant 0 : index
    %c1_9 = arith.constant 1 : index
    %7 = vector.load %arg1[%c0_7, %c0_8, %c1_9] : memref<1x4x512xf32, #tpu.memory_space<vmem>>, vector<1x4x384xf32>
    %8 = vector.shape_cast %7 : vector<1x4x384xf32> to vector<4x384xf32>
    %cst_10 = arith.constant dense<0.000000e+00> : vector<8x384xf32>
    %9 = tpu.matmul %6, %8, %cst_10 {dimension_numbers = #tpu.dot_dimension_numbers<[1], [0], [0], [1], [0, 0, 1, 1], [], []>} : vector<8x4xf32>, vector<4x384xf32>, vector<8x384xf32> -> vector<8x384xf32>
    %10 = arith.addf %4, %9 : vector<8x384xf32>
    %c2 = arith.constant 2 : index
    %c0_11 = arith.constant 0 : index
    %c0_12 = arith.constant 0 : index
    %11 = vector.load %arg2[%c2, %c0_11, %c0_12] : memref<9x8x4xf32, #tpu.memory_space<vmem>>, vector<1x8x4xf32>
    %12 = vector.shape_cast %11 : vector<1x8x4xf32> to vector<8x4xf32>
    %c0_13 = arith.constant 0 : index
    %c0_14 = arith.constant 0 : index
    %c2_15 = arith.constant 2 : index
    %13 = vector.load %arg1[%c0_13, %c0_14, %c2_15] : memref<1x4x512xf32, #tpu.memory_space<vmem>>, vector<1x4x384xf32>
    %14 = vector.shape_cast %13 : vector<1x4x384xf32> to vector<4x384xf32>
    %cst_16 = arith.constant dense<0.000000e+00> : vector<8x384xf32>
    %15 = tpu.matmul %12, %14, %cst_16 {dimension_numbers = #tpu.dot_dimension_numbers<[1], [0], [0], [1], [0, 0, 1, 1], [], []>} : vector<8x4xf32>, vector<4x384xf32>, vector<8x384xf32> -> vector<8x384xf32>
    %16 = arith.addf %10, %15 : vector<8x384xf32>
    %c3 = arith.constant 3 : index
    %c0_17 = arith.constant 0 : index
    %c0_18 = arith.constant 0 : index
    %17 = vector.load %arg2[%c3, %c0_17, %c0_18] : memref<9x8x4xf32, #tpu.memory_space<vmem>>, vector<1x8x4xf32>
    %18 = vector.shape_cast %17 : vector<1x8x4xf32> to vector<8x4xf32>
    %c0_19 = arith.constant 0 : index
    %c0_20 = arith.constant 0 : index
    %c18 = arith.constant 18 : index
    %19 = vector.load %arg1[%c0_19, %c0_20, %c18] : memref<1x4x512xf32, #tpu.memory_space<vmem>>, vector<1x4x384xf32>
    %20 = vector.shape_cast %19 : vector<1x4x384xf32> to vector<4x384xf32>
    %cst_21 = arith.constant dense<0.000000e+00> : vector<8x384xf32>
    %21 = tpu.matmul %18, %20, %cst_21 {dimension_numbers = #tpu.dot_dimension_numbers<[1], [0], [0], [1], [0, 0, 1, 1], [], []>} : vector<8x4xf32>, vector<4x384xf32>, vector<8x384xf32> -> vector<8x384xf32>
    %22 = arith.addf %16, %21 : vector<8x384xf32>
    %c4 = arith.constant 4 : index
    %c0_22 = arith.constant 0 : index
    %c0_23 = arith.constant 0 : index
    %23 = vector.load %arg2[%c4, %c0_22, %c0_23] : memref<9x8x4xf32, #tpu.memory_space<vmem>>, vector<1x8x4xf32>
    %24 = vector.shape_cast %23 : vector<1x8x4xf32> to vector<8x4xf32>
    %c0_24 = arith.constant 0 : index
    %c0_25 = arith.constant 0 : index
    %c19 = arith.constant 19 : index
    %25 = vector.load %arg1[%c0_24, %c0_25, %c19] : memref<1x4x512xf32, #tpu.memory_space<vmem>>, vector<1x4x384xf32>
    %26 = vector.shape_cast %25 : vector<1x4x384xf32> to vector<4x384xf32>
    %cst_26 = arith.constant dense<0.000000e+00> : vector<8x384xf32>
    %27 = tpu.matmul %24, %26, %cst_26 {dimension_numbers = #tpu.dot_dimension_numbers<[1], [0], [0], [1], [0, 0, 1, 1], [], []>} : vector<8x4xf32>, vector<4x384xf32>, vector<8x384xf32> -> vector<8x384xf32>
    %28 = arith.addf %22, %27 : vector<8x384xf32>
    %c5 = arith.constant 5 : index
    %c0_27 = arith.constant 0 : index
    %c0_28 = arith.constant 0 : index
    %29 = vector.load %arg2[%c5, %c0_27, %c0_28] : memref<9x8x4xf32, #tpu.memory_space<vmem>>, vector<1x8x4xf32>
    %30 = vector.shape_cast %29 : vector<1x8x4xf32> to vector<8x4xf32>
    %c0_29 = arith.constant 0 : index
    %c0_30 = arith.constant 0 : index
    %c20 = arith.constant 20 : index
    %31 = vector.load %arg1[%c0_29, %c0_30, %c20] : memref<1x4x512xf32, #tpu.memory_space<vmem>>, vector<1x4x384xf32>
    %32 = vector.shape_cast %31 : vector<1x4x384xf32> to vector<4x384xf32>
    %cst_31 = arith.constant dense<0.000000e+00> : vector<8x384xf32>
    %33 = tpu.matmul %30, %32, %cst_31 {dimension_numbers = #tpu.dot_dimension_numbers<[1], [0], [0], [1], [0, 0, 1, 1], [], []>} : vector<8x4xf32>, vector<4x384xf32>, vector<8x384xf32> -> vector<8x384xf32>
    %34 = arith.addf %28, %33 : vector<8x384xf32>
    %c6 = arith.constant 6 : index
    %c0_32 = arith.constant 0 : index
    %c0_33 = arith.constant 0 : index
    %35 = vector.load %arg2[%c6, %c0_32, %c0_33] : memref<9x8x4xf32, #tpu.memory_space<vmem>>, vector<1x8x4xf32>
    %36 = vector.shape_cast %35 : vector<1x8x4xf32> to vector<8x4xf32>
    %c0_34 = arith.constant 0 : index
    %c0_35 = arith.constant 0 : index
    %c36 = arith.constant 36 : index
    %37 = vector.load %arg1[%c0_34, %c0_35, %c36] : memref<1x4x512xf32, #tpu.memory_space<vmem>>, vector<1x4x384xf32>
    %38 = vector.shape_cast %37 : vector<1x4x384xf32> to vector<4x384xf32>
    %cst_36 = arith.constant dense<0.000000e+00> : vector<8x384xf32>
    %39 = tpu.matmul %36, %38, %cst_36 {dimension_numbers = #tpu.dot_dimension_numbers<[1], [0], [0], [1], [0, 0, 1, 1], [], []>} : vector<8x4xf32>, vector<4x384xf32>, vector<8x384xf32> -> vector<8x384xf32>
    %40 = arith.addf %34, %39 : vector<8x384xf32>
    %c7 = arith.constant 7 : index
    %c0_37 = arith.constant 0 : index
    %c0_38 = arith.constant 0 : index
    %41 = vector.load %arg2[%c7, %c0_37, %c0_38] : memref<9x8x4xf32, #tpu.memory_space<vmem>>, vector<1x8x4xf32>
    %42 = vector.shape_cast %41 : vector<1x8x4xf32> to vector<8x4xf32>
    %c0_39 = arith.constant 0 : index
    %c0_40 = arith.constant 0 : index
    %c37 = arith.constant 37 : index
    %43 = vector.load %arg1[%c0_39, %c0_40, %c37] : memref<1x4x512xf32, #tpu.memory_space<vmem>>, vector<1x4x384xf32>
    %44 = vector.shape_cast %43 : vector<1x4x384xf32> to vector<4x384xf32>
    %cst_41 = arith.constant dense<0.000000e+00> : vector<8x384xf32>
    %45 = tpu.matmul %42, %44, %cst_41 {dimension_numbers = #tpu.dot_dimension_numbers<[1], [0], [0], [1], [0, 0, 1, 1], [], []>} : vector<8x4xf32>, vector<4x384xf32>, vector<8x384xf32> -> vector<8x384xf32>
    %46 = arith.addf %40, %45 : vector<8x384xf32>
    %c8 = arith.constant 8 : index
    %c0_42 = arith.constant 0 : index
    %c0_43 = arith.constant 0 : index
    %47 = vector.load %arg2[%c8, %c0_42, %c0_43] : memref<9x8x4xf32, #tpu.memory_space<vmem>>, vector<1x8x4xf32>
    %48 = vector.shape_cast %47 : vector<1x8x4xf32> to vector<8x4xf32>
    %c0_44 = arith.constant 0 : index
    %c0_45 = arith.constant 0 : index
    %c38 = arith.constant 38 : index
    %49 = vector.load %arg1[%c0_44, %c0_45, %c38] : memref<1x4x512xf32, #tpu.memory_space<vmem>>, vector<1x4x384xf32>
    %50 = vector.shape_cast %49 : vector<1x4x384xf32> to vector<4x384xf32>
    %cst_46 = arith.constant dense<0.000000e+00> : vector<8x384xf32>
    %51 = tpu.matmul %48, %50, %cst_46 {dimension_numbers = #tpu.dot_dimension_numbers<[1], [0], [0], [1], [0, 0, 1, 1], [], []>} : vector<8x4xf32>, vector<4x384xf32>, vector<8x384xf32> -> vector<8x384xf32>
    %52 = arith.addf %46, %51 : vector<8x384xf32>
    %c0_47 = arith.constant 0 : index
    %c0_48 = arith.constant 0 : index
    %53 = vector.load %arg3[%c0_47, %c0_48] : memref<8x1xf32, #tpu.memory_space<vmem>>, vector<8x1xf32>
    %54 = vector.broadcast %53 : vector<8x1xf32> to vector<8x384xf32>
    %55 = arith.addf %52, %54 : vector<8x384xf32>
    %c0_49 = arith.constant 0 : index
    %c0_50 = arith.constant 0 : index
    %c0_51 = arith.constant 0 : index
    %56 = vector.load %arg4[%c0_49, %c0_50, %c0_51] : memref<1x8x384xf32, #tpu.memory_space<vmem>>, vector<1x8x384xf32>
    %57 = vector.shape_cast %56 : vector<1x8x384xf32> to vector<8x384xf32>
    %58 = vector.shape_cast %55 : vector<8x384xf32> to vector<1x8x384xf32>
    tpu.vector_store %arg4[%c0_49, %c0_50, %c0_51], %58 {strides = array<i32>} : memref<1x8x384xf32, #tpu.memory_space<vmem>>, vector<1x8x384xf32>,
    return
  }
  func.func @transform_0(%arg0: i32) -> (i32, i32, i32) {
    %c0_i32 = arith.constant 0 : i32
    %c0_i32_0 = arith.constant 0 : i32
    %c0_i32_1 = arith.constant 0 : i32
    return %arg0, %c0_i32, %c0_i32_0 : i32, i32, i32
  }
  func.func @transform_1(%arg0: i32) -> (i32, i32, i32) {
    %c0_i32 = arith.constant 0 : i32
    %c0_i32_0 = arith.constant 0 : i32
    %c0_i32_1 = arith.constant 0 : i32
    %c0_i32_2 = arith.constant 0 : i32
    return %c0_i32, %c0_i32_0, %c0_i32_1 : i32, i32, i32
  }
  func.func @transform_2(%arg0: i32) -> (i32, i32) {
    %c0_i32 = arith.constant 0 : i32
    %c0_i32_0 = arith.constant 0 : i32
    %c0_i32_1 = arith.constant 0 : i32
    return %c0_i32, %c0_i32_0 : i32, i32
  }
  func.func @transform_3(%arg0: i32) -> (i32, i32, i32) {
    %c0_i32 = arith.constant 0 : i32
    %c0_i32_0 = arith.constant 0 : i32
    %c0_i32_1 = arith.constant 0 : i32
    return %arg0, %c0_i32, %c0_i32_0 : i32, i32, i32
  }
}

</mosaic_0001>

<bundles_post_ra>
// kernel: conv3x3.1
= control target key start
LH: loop header
LB: loop body
LE: loop exit
PB: predicated region body
PF: predicated region fallthrough
CT: control target
= control target key end

     0   :  { %s1223_s12 = smov 0   ;;  %s1373_s0 = inlined_call_operand.vmem [shape: f32[2,4,512], index: 0, kind: input, shape index: {}]   ;;  %s1374_s1 = inlined_call_operand.vmem [shape: f32[9,8,4], index: 1, kind: input, shape index: {}]   ;;  %s1375_s2 = inlined_call_operand.vmem [shape: f32[8,1], index: 2, kind: input, shape index: {}]   ;;  %s1376_s3 = inlined_call_operand.vmem [shape: f32[2,8,384], index: 3, kind: output, shape index: {}]  }
   0x1 LB: > { %s1093_s13 = sadd.s32 4294967295, %s1192_s12   ;;  %p1097_p0 = scmp.ge.s32.totalorder %s1192_s12, 1  ;;  %s1192_s12 = sphi %s1223_s12, %s13_s12  }
   0x2   : > { %p137_p1 = scmp.lt.s32.totalorder %s1192_s12, 3 }
   0x4   : > { %p138_p2 = pnand %p1097_p0, %p137_p1 }
   0x5   : > { %p161_p3 = scmp.lt.s32.totalorder (!%p138_p2), %s1093_s13, 1  ;;  %s1194_s18 = smov (!%p138_p2), 127  }
   0x6   : > { %141 = sbr.rel (%p138_p2) target bundleno = 362 (0x16a), region = 32  ;;  %s1195_s19 = smov (!%p138_p2), 126  }
   0x7   : > { %s1196_s20 = smov (!%p138_p2), 110   ;;  %s1197_s21 = smov (!%p138_p2), 109  }
   0x8   : > { %s1198_s22 = smov (!%p138_p2), 108   ;;  %s1199_s23 = smov (!%p138_p2), 92  }
   0x9   : > { %s1200_s24 = smov (!%p138_p2), 91   ;;  %s1201_s25 = smov (!%p138_p2), 90  }
   0xb   : > { %s1378_s13 = smov (!%p161_p3, %s1093_s13), 1  ;;  %vm203_vm0 = vcmask 1043456   ;;  %vm199_vm1 = vcmask 31744   ;;  %v171_v39 = vld [vmem:[%s1374_s1] sm:$0xff]  ;;  %vm195_vm2 = vcmask 1039360   ;;  %vm368_vm3 = vcmask 1031168  }
   0xc   : > { %s1165_s14 = sshll.u32 %s1378_s13, 4  ;;  %v1101_v50 = vld [vmem:[%s1374_s1 + $0x8] sm:$0xff]  ;;  %vm465_vm4 = vcmask 900096   ;;  %v1114_v54 = vld [vmem:[%s1374_s1 + $0x10] sm:$0xff]  ;;  %v1121_v60 = vld [vmem:[%s1374_s1 + $0x18] sm:$0xff]  ;;  %vm562_vm5 = vcmask 891904  }
   0xd   : > { %s165_s17 = scalar_lea.vmem %s1373_s0, %s1165_s14  ;;  %vm659_vm6 = vcmask 883712   ;;  %vm756_vm7 = vcmask 752640   ;;  %vm853_vm8 = vcmask 744448   ;;  %vm950_vm9 = vcmask 736256  }
   0xe   : > { %v1237_v0 = vld [vmem:[%s165_s17 + $0x8] sm:$0xff]  ;;  %v1239_v1 = vld [vmem:[%s165_s17] sm:$0xff] }
   0xf   : > { %182 = vst [vmem:[#allocation1 + $0x10] ss:$2 sm:$0xff] %v1237_v0  ;;  %v173_v2 = vld [vmem:[%s165_s17 + $0x8] sm:$0xf] }
  0x10   : > { %180 = vst [vmem:[#allocation1] ss:$2 sm:$0xff] %v1239_v1 }
  0x16   : > { %v185_v3 = vld.sshfl [vmem:[#allocation1 + $0x10] sm:$0xff pattern:$0x75316420]  ;;  %v186_v4 = vld.sshfl [vmem:[#allocation1 + $0x18] sm:$0xff pattern:$0x75316420] }
  0x17   : > { %191 = vrot.lane.b32.xlu0 %v185_v3, %s1194_s18  ;;  %v183_v5 = vld.sshfl [vmem:[#allocation1] sm:$0xff pattern:$0x75316420]  ;;  %274 = vst [vmem:[#allocation1 + $0x10] ss:$2 sm:$0xff] %v173_v2 }
  0x18   : > { %187 = vrot.lane.b32.xlu1 %v183_v5, %s1194_s18  ;;  %v184_v6 = vld.sshfl [vmem:[#allocation1 + $0x8] sm:$0xff pattern:$0x75316420]  ;;  %v1128_v3 = vld [vmem:[%s1374_s1 + $0x20] sm:$0xff] }
  0x19   : > { %272 = vst [vmem:[#allocation1] ss:$2 sm:$0xff] %v1239_v1 }
  0x1e   : > { %v1244_v7 = vld.sshfl [vmem:[#allocation1 + $0x10] sm:$0xff pattern:$0x75316420] }
  0x1f   : > { %193 = vrot.lane.b32.xlu0 %v186_v4, %s1194_s18  ;;  %355 = vst [vmem:[#allocation1 + $0x10] ss:$2 sm:$0xff] %v1237_v0 }
  0x20   : > { %189 = vrot.lane.b32.xlu1 %v184_v6, %s1194_s18  ;;  %v1247_v8 = vld.sshfl [vmem:[#allocation1] sm:$0xff pattern:$0x75316420]  ;;  %v1249_v9 = vld.sshfl [vmem:[#allocation1 + $0x8] sm:$0xff pattern:$0x75316420] }
  0x21   : > { %353 = vst [vmem:[#allocation1] ss:$2 sm:$0xff] %v1239_v1  ;;  %1108 = vmatpush.msk.msra.mxu3 %vm203_vm0, %v1247_v8 }
  0x22   : > { %1109 = vmatmul.msk.f32.vlgmr.msra.gmra.mxu3 %vm199_vm1, %v171_v39 }
  0x26   : > { %v358_v10 = vld.sshfl [vmem:[#allocation1 + $0x10] sm:$0xff pattern:$0x75316420]  ;;  %v359_v11 = vld.sshfl [vmem:[#allocation1 + $0x18] sm:$0xff pattern:$0x75316420] }
  0x27   : > { %364 = vrot.lane.b32.xlu0 %v358_v10, %s1195_s19  ;;  %452 = vst [vmem:[#allocation1 + $0x10] ss:$2 sm:$0xff] %v1237_v0 }
  0x28   : > { %v356_v12 = vld.sshfl [vmem:[#allocation1] sm:$0xff pattern:$0x75316420]  ;;  %v357_v13 = vld.sshfl [vmem:[#allocation1 + $0x8] sm:$0xff pattern:$0x75316420] }
  0x29   : > { %360 = vrot.lane.b32.xlu2 %v356_v12, %s1195_s19  ;;  %450 = vst [vmem:[#allocation1] ss:$2 sm:$0xff] %v1239_v1 }
  0x2e   : > { %v455_v14 = vld.sshfl [vmem:[#allocation1 + $0x10] sm:$0xff pattern:$0x75316420]  ;;  %v456_v15 = vld.sshfl [vmem:[#allocation1 + $0x18] sm:$0xff pattern:$0x75316420] }
  0x2f   : > { %366 = vrot.lane.b32.xlu0 %v359_v11, %s1195_s19  ;;  %549 = vst [vmem:[#allocation1 + $0x10] ss:$2 sm:$0xff] %v1237_v0  ;;  %v1135_v11 = vld [vmem:[%s1374_s1 + $0x28] sm:$0xff] }
  0x30   : > { %v454_v16 = vld.sshfl [vmem:[#allocation1 + $0x8] sm:$0xff pattern:$0x75316420]  ;;  %v453_v17 = vld.sshfl [vmem:[#allocation1] sm:$0xff pattern:$0x75316420] }
  0x31   : > { %459 = vrot.lane.b32.xlu1 %v454_v16, %s1196_s20  ;;  %362 = vrot.lane.b32.xlu2 %v357_v13, %s1195_s19  ;;  %547 = vst [vmem:[#allocation1] ss:$2 sm:$0xff] %v1239_v1 }
  0x36   : > { %v552_v18 = vld.sshfl [vmem:[#allocation1 + $0x10] sm:$0xff pattern:$0x75316420]  ;;  %v553_v19 = vld.sshfl [vmem:[#allocation1 + $0x18] sm:$0xff pattern:$0x75316420] }
  0x37   : > { %558 = vrot.lane.b32.xlu0 %v552_v18, %s1197_s21  ;;  %646 = vst [vmem:[#allocation1 + $0x10] ss:$2 sm:$0xff] %v1237_v0  ;;  %v1142_v18 = vld [vmem:[%s1374_s1 + $0x30] sm:$0xff] }
  0x38   : > { %v550_v20 = vld.sshfl [vmem:[#allocation1] sm:$0xff pattern:$0x75316420]  ;;  %v551_v21 = vld.sshfl [vmem:[#allocation1 + $0x8] sm:$0xff pattern:$0x75316420] }
  0x39   : > { %457 = vrot.lane.b32.xlu1 %v453_v17, %s1196_s20  ;;  %461 = vrot.lane.b32.xlu2 %v455_v14, %s1196_s20  ;;  %644 = vst [vmem:[#allocation1] ss:$2 sm:$0xff] %v1239_v1 }
  0x3e   : > { %v649_v22 = vld.sshfl [vmem:[#allocation1 + $0x10] sm:$0xff pattern:$0x75316420]  ;;  %v650_v23 = vld.sshfl [vmem:[#allocation1 + $0x18] sm:$0xff pattern:$0x75316420] }
  0x3f   : > { %556 = vrot.lane.b32.xlu0 %v551_v21, %s1197_s21  ;;  %743 = vst [vmem:[#allocation1 + $0x10] ss:$2 sm:$0xff] %v1237_v0 }
  0x40   : > { %v647_v24 = vld.sshfl [vmem:[#allocation1] sm:$0xff pattern:$0x75316420]  ;;  %v648_v25 = vld.sshfl [vmem:[#allocation1 + $0x8] sm:$0xff pattern:$0x75316420] }
  0x41   : > { %560 = vrot.lane.b32.xlu1 %v553_v19, %s1197_s21  ;;  %463 = vrot.lane.b32.xlu2 %v456_v15, %s1196_s20  ;;  %741 = vst [vmem:[#allocation1] ss:$2 sm:$0xff] %v1239_v1 }
  0x46   : > { %v746_v26 = vld.sshfl [vmem:[#allocation1 + $0x10] sm:$0xff pattern:$0x75316420]  ;;  %v747_v27 = vld.sshfl [vmem:[#allocation1 + $0x18] sm:$0xff pattern:$0x75316420] }
  0x47   : > { %657 = vrot.lane.b32.xlu0 %v650_v23, %s1198_s22  ;;  %840 = vst [vmem:[#allocation1 + $0x10] ss:$2 sm:$0xff] %v1237_v0  ;;  %v1026_v23 = vld [vmem:[%s1375_s2] sm:$0xff] }
  0x48   : > { %v745_v28 = vld.sshfl [vmem:[#allocation1 + $0x8] sm:$0xff pattern:$0x75316420]  ;;  %v744_v29 = vld.sshfl [vmem:[#allocation1] sm:$0xff pattern:$0x75316420] }
  0x49   : > { %651 = vrot.lane.b32.xlu1 %v647_v24, %s1198_s22  ;;  %554 = vrot.lane.b32.xlu2 %v550_v20, %s1197_s21  ;;  %838 = vst [vmem:[#allocation1] ss:$2 sm:$0xff] %v1239_v1  ;;  %v1149_v20 = vld [vmem:[%s1374_s1 + $0x38] sm:$0xff]  ;;  %v1202_v24 = vmov 0   ;;  %s1166_s21 = smul.u32 24, %s1378_s13 }
  0x4a   : > { %1184 = vset.pattern.permute.xlu2 %v1202_v24  ;;  %1185 = vset.pattern.permute.xlu0 %v1202_v24 }
  0x4e   : > { %v843_v30 = vld.sshfl [vmem:[#allocation1 + $0x10] sm:$0xff pattern:$0x75316420]  ;;  %v844_v31 = vld.sshfl [vmem:[#allocation1 + $0x18] sm:$0xff pattern:$0x75316420] }
  0x4f   : > { %748 = vrot.lane.b32.xlu0 %v744_v29, %s1199_s23  ;;  %937 = vst [vmem:[#allocation1 + $0x10] ss:$2 sm:$0xff] %v1237_v0 }
  0x50   : > { %v842_v32 = vld.sshfl [vmem:[#allocation1 + $0x8] sm:$0xff pattern:$0x75316420]  ;;  %v841_v33 = vld.sshfl [vmem:[#allocation1] sm:$0xff pattern:$0x75316420] }
  0x51   : > { %750 = vrot.lane.b32.xlu1 %v745_v28, %s1199_s23  ;;  %653 = vrot.lane.b32.xlu2 %v648_v25, %s1198_s22  ;;  %935 = vst [vmem:[#allocation1] ss:$2 sm:$0xff] %v1239_v1 }
  0x56   : > { %v940_v35 = vld.sshfl [vmem:[#allocation1 + $0x10] sm:$0xff pattern:$0x75316420]  ;;  %v941_v37 = vld.sshfl [vmem:[#allocation1 + $0x18] sm:$0xff pattern:$0x75316420] }
  0x57   : > { %849 = vrot.lane.b32.xlu0 %v843_v30, %s1200_s24 }
  0x58   : > { %v938_v34 = vld.sshfl [vmem:[#allocation1] sm:$0xff pattern:$0x75316420]  ;;  %v939_v36 = vld.sshfl [vmem:[#allocation1 + $0x8] sm:$0xff pattern:$0x75316420] }
  0x59   : > { %752 = vrot.lane.b32.xlu1 %v746_v26, %s1199_s23  ;;  %655 = vrot.lane.b32.xlu2 %v649_v22, %s1198_s22 }
  0x5f   : > { %851 = vrot.lane.b32.xlu0 %v844_v31, %s1200_s24 }
  0x61   : > { %754 = vrot.lane.b32.xlu1 %v747_v27, %s1199_s23  ;;  %847 = vrot.lane.b32.xlu2 %v842_v32, %s1200_s24 }
  0x67   : > { %942 = vrot.lane.b32.xlu0 %v938_v34, %s1201_s25 }
  0x69   : > { %946 = vrot.lane.b32.xlu1 %v940_v35, %s1201_s25  ;;  %845 = vrot.lane.b32.xlu2 %v841_v33, %s1200_s24  ;;  %v1156_v35 = vld [vmem:[%s1374_s1 + $0x40] sm:$0xff]  ;;  %s170_s24 = scalar_lea.vmem %s1376_s3, %s1166_s21 }
  0x71   : > { %944 = vrot.lane.b32.xlu1 %v939_v36, %s1201_s25  ;;  %948 = vrot.lane.b32.xlu2 %v941_v37, %s1201_s25 }
  0x79   : > { %1029 = vperm.xlu2 %1184, %v1026_v23  }
  0x83   : > { %v361_v38 = vpop.permute.xlu2 %360 }
  0x89   : > { %v192_v40 = vpop.permute.xlu0 %191 }
  0x8a   : > { %v188_v41 = vpop.permute.xlu1 %187 }
  0x8b   : > { %v363_v42 = vpop.permute.xlu2 %362 }
  0x8c   : > { %v369_v46 = vsel %vm368_vm3, %v361_v38, %v363_v42 }
  0x91   : > { %v194_v43 = vpop.permute.xlu0 %193 }
  0x92   : > { %v190_v44 = vpop.permute.xlu1 %189  ;;  %v198_v45 = vsel %vm195_vm2, %v192_v40, %v194_v43 }
  0x93   : > { %v196_v47 = vsel %vm195_vm2, %v188_v41, %v190_v44  ;;  %v197_v48 = vsel %vm195_vm2, %v190_v44, %v192_v40  ;;  %1106 = vmatpush.msk.msra.mxu2 %vm203_vm0, %v198_v45  ;;  %v462_v49 = vpop.permute.xlu2 %461 }
  0x94   : > { %1102 = vmatpush.msk.msra.mxu0 %vm203_vm0, %v196_v47  ;;  %1104 = vmatpush.msk.msra.mxu1 %vm203_vm0, %v197_v48 }
  0x95   : > { %1115 = vmatpush.msk.msrb.mxu2 %vm203_vm0, %v369_v46  ;;  %1103 = vmatmul.msk.f32.vlgmr.msra.gmra.mxu0 %vm199_vm1, %v1101_v50 }
  0x96   : > { %1110 = vmatpush.msk.msrb.mxu0 %vm203_vm0, %v1249_v9  ;;  %1105 = vmatmul.msk.f32.vlgmr.msra.gmra.mxu1 %vm199_vm1, %v1101_v50 }
  0x97   : > { %1107 = vmatmul.msk.f32.vlgmr.msra.gmra.mxu2 %vm199_vm1, %v1101_v50  ;;  %1112 = vmatpush.msk.msrb.mxu1 %vm203_vm0, %v1244_v7 }
  0x99   : > { %v365_v51 = vpop.permute.xlu0 %364 }
  0x9a   : > { %v370_v52 = vsel %vm368_vm3, %v363_v42, %v365_v51 }
  0x9b   : > { %1117 = vmatpush.msk.msrb.mxu3 %vm203_vm0, %v370_v52  ;;  %v464_v53 = vpop.permute.xlu2 %463 }
  0x9c   : > { %v468_v55 = vsel %vm465_vm4, %v462_v49, %v464_v53  ;;  %1118 = vmatmul.msk.f32.vlgmr.msrb.gmra.mxu3 %vm199_vm1, %v1114_v54 }
  0x9d   : > { %1126 = vmatpush.msk.msra.mxu3 %vm203_vm0, %v468_v55  ;;  %1111 = vmatmul.msk.f32.vlgmr.msrb.gmra.mxu0 %vm199_vm1, %v171_v39 }
  0x9e   : > { %1113 = vmatmul.msk.f32.vlgmr.msrb.gmra.mxu1 %vm199_vm1, %v171_v39 }
  0x9f   : > { %1116 = vmatmul.msk.f32.vlgmr.msrb.gmra.mxu2 %vm199_vm1, %v1114_v54 }
  0xa1   : > { %v367_v56 = vpop.permute.xlu0 %366 }
  0xa2   : > { %v371_v57 = vsel %vm368_vm3, %v365_v51, %v367_v56 }
  0xa3   : > { %v460_v58 = vpop.permute.xlu1 %459  ;;  %1119 = vmatpush.msk.msra.mxu0 %vm203_vm0, %v371_v57  ;;  %v555_v59 = vpop.permute.xlu2 %554 }
  0xa4   : > { %v467_v61 = vsel %vm465_vm4, %v460_v58, %v462_v49  ;;  %1127 = vmatmul.msk.f32.vlgmr.msra.gmra.mxu3 %vm199_vm1, %v1121_v60 }
  0xa5   : > { %1124 = vmatpush.msk.msra.mxu2 %vm203_vm0, %v467_v61  ;;  %1120 = vmatmul.msk.f32.vlgmr.msra.gmra.mxu0 %vm199_vm1, %v1114_v54  ;;  %v304_v44 = vpop.f32.mrf.mxu3 }
  0xa7   : > { %1125 = vmatmul.msk.f32.vlgmr.msra.gmra.mxu2 %vm199_vm1, %v1121_v60 }
  0xa9   : > { %v559_v62 = vpop.permute.xlu0 %558 }
  0xab   : > { %v458_v63 = vpop.permute.xlu1 %457  ;;  %v654_v0 = vpop.permute.xlu2 %653 }
  0xac   : > { %v466_v1 = vsel %vm465_vm4, %v458_v63, %v460_v58 }
  0xad   : > { %1122 = vmatpush.msk.msra.mxu1 %vm203_vm0, %v466_v1 }
  0xae   : > { %1123 = vmatmul.msk.f32.vlgmr.msra.gmra.mxu1 %vm199_vm1, %v1121_v60 }
  0xb1   : > { %v557_v2 = vpop.permute.xlu0 %556 }
  0xb2   : > { %v563_v4 = vsel %vm562_vm5, %v555_v59, %v557_v2  ;;  %v564_v5 = vsel %vm562_vm5, %v557_v2, %v559_v62 }
  0xb3   : > { %v561_v6 = vpop.permute.xlu1 %560  ;;  %1131 = vmatpush.msk.msrb.mxu1 %vm203_vm0, %v564_v5  ;;  %1129 = vmatpush.msk.msrb.mxu0 %vm203_vm0, %v563_v4  ;;  %v656_v7 = vpop.permute.xlu2 %655 }
  0xb4   : > { %v565_v8 = vsel %vm562_vm5, %v559_v62, %v561_v6  ;;  %v661_v9 = vsel %vm659_vm6, %v654_v0, %v656_v7  ;;  %1130 = vmatmul.msk.f32.vlgmr.msrb.gmra.mxu0 %vm199_vm1, %v1128_v3 }
  0xb5   : > { %1133 = vmatpush.msk.msrb.mxu2 %vm203_vm0, %v565_v8  ;;  %1138 = vmatpush.msk.msra.mxu0 %vm203_vm0, %v661_v9 }
  0xb6   : > { %1132 = vmatmul.msk.f32.vlgmr.msrb.gmra.mxu1 %vm199_vm1, %v1128_v3  ;;  %1134 = vmatmul.msk.f32.vlgmr.msrb.gmra.mxu2 %vm199_vm1, %v1128_v3 }
  0xb9   : > { %v658_v10 = vpop.permute.xlu0 %657 }
  0xba   : > { %v662_v12 = vsel %vm659_vm6, %v656_v7, %v658_v10 }
  0xbb   : > { %v652_v13 = vpop.permute.xlu1 %651  ;;  %v848_v14 = vpop.permute.xlu2 %847  ;;  %1140 = vmatpush.msk.msra.mxu1 %vm203_vm0, %v662_v12 }
  0xbc   : > { %v660_v15 = vsel %vm659_vm6, %v652_v13, %v654_v0  ;;  %1139 = vmatmul.msk.f32.vlgmr.msra.gmra.mxu0 %vm199_vm1, %v1135_v11 }
  0xbd   : > { %1136 = vmatpush.msk.msrb.mxu3 %vm203_vm0, %v660_v15 }
  0xbe   : > { %1137 = vmatmul.msk.f32.vlgmr.msrb.gmra.mxu3 %vm199_vm1, %v1135_v11  ;;  %1141 = vmatmul.msk.f32.vlgmr.msra.gmra.mxu1 %vm199_vm1, %v1135_v11 }
  0xc1   : > { %v749_v16 = vpop.permute.xlu0 %748 }
  0xc3   : > { %v751_v17 = vpop.permute.xlu1 %750  ;;  %v846_v19 = vpop.permute.xlu2 %845 }
  0xc4   : > { %v757_v21 = vsel %vm756_vm7, %v749_v16, %v751_v17  ;;  %v854_v22 = vsel %vm853_vm8, %v846_v19, %v848_v14 }
  0xc5   : > { %1143 = vmatpush.msk.msra.mxu2 %vm203_vm0, %v757_v21  ;;  %1150 = vmatpush.msk.msrb.mxu1 %vm203_vm0, %v854_v22 }
  0xc6   : > { %1144 = vmatmul.msk.f32.vlgmr.msra.gmra.mxu2 %vm199_vm1, %v1142_v18  ;;  %1151 = vmatmul.msk.f32.vlgmr.msrb.gmra.mxu1 %vm199_vm1, %v1149_v20 }
  0xc9   : > { %v850_v25 = vpop.permute.xlu0 %849 }
  0xca   : > { %v855_v26 = vsel %vm853_vm8, %v848_v14, %v850_v25 }
  0xcb   : > { %v753_v27 = vpop.permute.xlu1 %752  ;;  %1152 = vmatpush.msk.msrb.mxu2 %vm203_vm0, %v855_v26  ;;  %v949_v33 = vpop.permute.xlu2 %948 }
  0xcc   : > { %v758_v28 = vsel %vm756_vm7, %v751_v17, %v753_v27 }
  0xcd   : > { %1145 = vmatpush.msk.msra.mxu3 %vm203_vm0, %v758_v28 }
  0xce   : > { %1146 = vmatmul.msk.f32.vlgmr.msra.gmra.mxu3 %vm199_vm1, %v1142_v18  ;;  %1153 = vmatmul.msk.f32.vlgmr.msrb.gmra.mxu2 %vm199_vm1, %v1149_v20 }
  0xd1   : > { %v852_v29 = vpop.permute.xlu0 %851 }
  0xd2   : > { %v856_v30 = vsel %vm853_vm8, %v850_v25, %v852_v29 }
  0xd3   : > { %v755_v31 = vpop.permute.xlu1 %754  ;;  %1154 = vmatpush.msk.msrb.mxu3 %vm203_vm0, %v856_v30  ;;  %v1030_v21 = vpop.permute.xlu2 %1029 }
  0xd4   : > { %v759_v32 = vsel %vm756_vm7, %v753_v27, %v755_v31 }
  0xd5   : > { %1147 = vmatpush.msk.msrb.mxu0 %vm203_vm0, %v759_v32 }
  0xd6   : > { %1148 = vmatmul.msk.f32.vlgmr.msrb.gmra.mxu0 %vm199_vm1, %v1142_v18  ;;  %1155 = vmatmul.msk.f32.vlgmr.msrb.gmra.mxu3 %vm199_vm1, %v1149_v20 }
  0xd9   : > { %v943_v37 = vpop.permute.xlu0 %942 }
  0xdb   : > { %v947_v34 = vpop.permute.xlu1 %946 }
  0xdc   : > { %v953_v36 = vsel %vm950_vm9, %v947_v34, %v949_v33 }
  0xdd   : > { %1161 = vmatpush.msk.msra.mxu2 %vm203_vm0, %v953_v36 }
  0xde   : > { %1162 = vmatmul.msk.f32.vlgmr.msra.gmra.mxu2 %vm199_vm1, %v1156_v35 }
  0xe3   : > { %v945_v38 = vpop.permute.xlu1 %944 }
  0xe4   : > { %v952_v39 = vsel %vm950_vm9, %v945_v38, %v947_v34  ;;  %v951_v40 = vsel %vm950_vm9, %v943_v37, %v945_v38 }
  0xe5   : > { %1157 = vmatpush.msk.msra.mxu0 %vm203_vm0, %v951_v40  ;;  %1159 = vmatpush.msk.msra.mxu1 %vm203_vm0, %v952_v39 }
  0xe6   : > { %1158 = vmatmul.msk.f32.vlgmr.msra.gmra.mxu0 %vm199_vm1, %v1156_v35  ;;  %1160 = vmatmul.msk.f32.vlgmr.msra.gmra.mxu1 %vm199_vm1, %v1156_v35 }
 0x112   : > { %v227_v41 = vpop.f32.mrf.mxu0 }
 0x113   : > { %v247_v42 = vpop.f32.mrf.mxu1  ;;  %v305_v59 = vadd.f32 %v304_v44, %v227_v41 }
 0x11a   : > { %v267_v43 = vpop.f32.mrf.mxu2  ;;  %v324_v45 = vpop.f32.mrf.mxu0 }
 0x11b   : > { %v344_v46 = vpop.f32.mrf.mxu1  ;;  %v325_v57 = vadd.f32 %v324_v45, %v247_v42 }
 0x11c   : > { %v345_v58 = vadd.f32 %v344_v46, %v267_v43 }
 0x11f   : > { %v418_v48 = vpop.f32.mrf.mxu3 }
 0x120   : > { %v442_v60 = vadd.f32 %v418_v48, %v325_v57 }
 0x122   : > { %v398_v47 = vpop.f32.mrf.mxu2  ;;  %v438_v49 = vpop.f32.mrf.mxu0 }
 0x123   : > { %v443_v61 = vadd.f32 %v438_v49, %v345_v58  ;;  %v441_v63 = vadd.f32 %v398_v47, %v305_v59 }
 0x127   : > { %v535_v52 = vpop.f32.mrf.mxu3 }
 0x128   : > { %v540_v4 = vadd.f32 %v535_v52, %v443_v61 }
 0x12a   : > { %v515_v51 = vpop.f32.mrf.mxu2 }
 0x12b   : > { %v495_v50 = vpop.f32.mrf.mxu1  ;;  %v539_v3 = vadd.f32 %v515_v51, %v442_v60 }
 0x12c   : > { %v538_v5 = vadd.f32 %v495_v50, %v441_v63 }
 0x131   : > { %v592_v53 = vpop.f32.mrf.mxu0 }
 0x132   : > { %v635_v9 = vadd.f32 %v592_v53, %v538_v5 }
 0x133   : > { %v612_v54 = vpop.f32.mrf.mxu1 }
 0x134   : > { %v636_v6 = vadd.f32 %v612_v54, %v539_v3 }
 0x139   : > { %v632_v55 = vpop.f32.mrf.mxu2  ;;  %v709_v0 = vpop.f32.mrf.mxu0 }
 0x13a   : > { %v637_v7 = vadd.f32 %v632_v55, %v540_v4  ;;  %v733_v13 = vadd.f32 %v709_v0, %v636_v6 }
 0x13b   : > { %v729_v1 = vpop.f32.mrf.mxu1 }
 0x13c   : > { %v734_v14 = vadd.f32 %v729_v1, %v637_v7 }
 0x141   : > { %v689_v56 = vpop.f32.mrf.mxu3 }
 0x142   : > { %v732_v12 = vadd.f32 %v689_v56, %v635_v9 }
 0x143   : > { %v883_v10 = vpop.f32.mrf.mxu1 }
 0x149   : > { %v786_v62 = vpop.f32.mrf.mxu2 }
 0x14a   : > { %v829_v16 = vadd.f32 %v786_v62, %v732_v12 }
 0x14c   : > { %v926_v22 = vadd.f32 %v883_v10, %v829_v16 }
 0x151   : > { %v806_v2 = vpop.f32.mrf.mxu3  ;;  %v903_v8 = vpop.f32.mrf.mxu2 }
 0x152   : > { %v830_v17 = vadd.f32 %v806_v2, %v733_v13 }
 0x153   : > { %v826_v11 = vpop.f32.mrf.mxu0 }
 0x154   : > { %v831_v18 = vadd.f32 %v826_v11, %v734_v14  ;;  %v927_v23 = vadd.f32 %v903_v8, %v830_v17 }
 0x159   : > { %v923_v15 = vpop.f32.mrf.mxu3 }
 0x15a   : > { %v928_v19 = vadd.f32 %v923_v15, %v831_v18 }
 0x161   : > { %v1020_v20 = vpop.f32.mrf.mxu2 }
 0x162   : > { %v1025_v24 = vadd.f32 %v1020_v20, %v928_v19 }
 0x163   : > { %v980_v25 = vpop.f32.mrf.mxu0  ;;  %v1000_v26 = vpop.f32.mrf.mxu1 }
 0x164   : > { %v1034_v27 = vadd.f32 %v1030_v21, %v1025_v24  ;;  %v1023_v28 = vadd.f32 %v980_v25, %v926_v22  ;;  %v1024_v29 = vadd.f32 %v1000_v26, %v927_v23 }
 0x166   : > { %1037 = vst [vmem:[%s170_s24 + $0x10] sm:$0xff] %v1034_v27  ;;  %v1032_v30 = vadd.f32 %v1030_v21, %v1023_v28  ;;  %v1033_v31 = vadd.f32 %v1030_v21, %v1024_v29 }
 0x168   : > { %1035 = vst [vmem:[%s170_s24] sm:$0xff] %v1032_v30 }
 0x169   : > { %1036 = vst [vmem:[%s170_s24 + $0x8] sm:$0xff] %v1033_v31 }
 0x16a PF: > { %s13_s12 = sadd.s32 1, %s1192_s12  }
 0x16b   : > { %p10_p4 = scmp.ge.s32.totalorder %s13_s12, 4  }
 0x16d   :  { %12 = sbr.rel (!%p10_p4) target bundleno = 1 (0x1), region = 79 }

</bundles_post_ra>
